<compile_context>
chip_gen: v6e
topology: v6e:2x2x1
jax: 0.10.0
libtpu: 0.0.40
codegen_flags: <defaults>
</compile_context>

<pallas_src>
import jax
import jax.numpy as jnp
from jax.experimental import pallas as pl
from jax.experimental.pallas import tpu as pltpu

KERNEL_SIZE = 5
PAD = (KERNEL_SIZE - 1) // 2                 # = 2 (AvgPool2d padding)
INV_KK = 1.0 / float(KERNEL_SIZE * KERNEL_SIZE)

# Per-block f32 budget.  With double-buffered in + out and two single-buffered
# scratches this keeps total VMEM well under the limit on every chip.
_MAX_BLOCK_BYTES = 4 * 1024 * 1024


def filter_high_kernel(x_ref, o_ref, row_ref, tot_ref):
    # x_ref / o_ref: (TB, H, W) block of the flattened (N*C, H, W) planes.
    # H is the sublane axis, W the lane axis; the stencil never mixes planes,
    # so plane blocks are fully independent (safe under "parallel" sharding).
    _, H, W = x_ref.shape
    x = x_ref[...].astype(jnp.float32)

    # --- separable 5x5 box sum with zero padding (count_include_pad=True) ---
    # Horizontal pass (along W / lanes), accumulated in place into VMEM
    # scratch via statically sliced stores: no concat-materialised buffers.
    row_ref[...] = x                                   # d = 0 tap
    for d in (1, 2):
        row_ref[:, :, d:] += x[:, :, :W - d]           # left neighbours
        row_ref[:, :, :W - d] += x[:, :, d:]           # right neighbours

    # Vertical pass (along H / sublanes) on the row sums.
    r = row_ref[...]
    tot_ref[...] = r                                   # d = 0 tap
    for d in (1, 2):
        tot_ref[:, d:, :] += r[:, :H - d, :]
        tot_ref[:, :H - d, :] += r[:, d:, :]

    # Folded epilogue: 0.5 + 0.5*(x - total/25) = 0.5 + 0.5*x - (0.5/25)*total
    o_ref[...] = (0.5 + 0.5 * x
                  - (0.5 * INV_KK) * tot_ref[...]).astype(o_ref.dtype)


def filter_high(img):
    """img: (N, C, H, W) float array -> (N, C, H, W), FilterHigh() defaults."""
    N, C, H, W = img.shape
    NC = N * C
    x = img.reshape(NC, H, W)                          # free reshape, no copy

    plane_bytes = H * W * 4
    tb = max(1, min(NC, _MAX_BLOCK_BYTES // max(plane_bytes, 1)))
    # Give v7x's second TensorCore work once blocks are large enough to
    # amortise the ~0.35 us per-step overhead (tiny inputs stay single-step).
    if NC > 1 and pl.cdiv(NC, tb) == 1 and NC * plane_bytes >= (1 << 20):
        tb = pl.cdiv(NC, 2)
    grid_n = pl.cdiv(NC, tb)

    out = pl.pallas_call(
        filter_high_kernel,
        out_shape=jax.ShapeDtypeStruct((NC, H, W), img.dtype),
        grid=(grid_n,),
        # Block covers the full (H, W) extent, so the (8, 128) constraint is
        # satisfied by "equal to the full array dims" on the last two axes.
        in_specs=[pl.BlockSpec((tb, H, W), lambda g: (g, 0, 0))],
        out_specs=pl.BlockSpec((tb, H, W), lambda g: (g, 0, 0)),
        scratch_shapes=[pltpu.VMEM((tb, H, W), jnp.float32),
                        pltpu.VMEM((tb, H, W), jnp.float32)],
        compiler_params=pltpu.CompilerParams(
            # Independent plane blocks -> shard across TensorCores when >1.
            dimension_semantics=("parallel",),
            # Above the 16 MiB v5e default, safe on v7x (64 MiB physical).
            vmem_limit_bytes=48 * 1024 * 1024,
        ),
    )(x)

    return out.reshape(N, C, H, W)


def _reference(img):
    # Pure-JAX reference: AvgPool2d(5, stride=1, pad=2, count_include_pad=True)
    # followed by 0.5 + 0.5 * (img - avg).
    N, C, H, W = img.shape
    xp = jnp.pad(img.astype(jnp.float32),
                 ((0, 0), (0, 0), (PAD, PAD), (PAD, PAD)))
    acc = jnp.zeros((N, C, H, W), jnp.float32)
    for di in range(KERNEL_SIZE):
        for dj in range(KERNEL_SIZE):
            acc = acc + xp[:, :, di:di + H, dj:dj + W]
    avg = acc / float(KERNEL_SIZE * KERNEL_SIZE)
    return (0.5 + 0.5 * (img.astype(jnp.float32) - avg)).astype(img.dtype)


if __name__ == "__main__":
    key = jax.random.PRNGKey(0)
    x = jax.random.uniform(key, (2, 4, 16, 16), dtype=jnp.float32)

    out = filter_high(x)
    jax.block_until_ready(out)

    ref = _reference(x)
    assert out.shape == x.shape and out.dtype == x.dtype
    assert jnp.max(jnp.abs(out - ref)) < 1e-5

    print("KERNEL_OK")
</pallas_src>

<mosaic_0001>
module attributes {stable_mosaic.version = 11 : i64} {
  func.func @filter_high_kernel(%arg0: i32, %arg1: memref<8x16x16xf32, #tpu.memory_space<vmem>>, %arg2: memref<8x16x16xf32, #tpu.memory_space<vmem>>, %arg3: memref<8x16x16xf32, #tpu.memory_space<vmem>>, %arg4: memref<8x16x16xf32, #tpu.memory_space<vmem>>) attributes {dimension_semantics = [#tpu.dimension_semantics<parallel>], iteration_bounds = array<i64: 1>, scalar_prefetch = 0 : i64, scratch_operands = 2 : i64, tpu.core_type = #tpu.core_type<tc>, window_params = [{transform_indices = @transform_0, window_bounds = array<i64: 8, 16, 16>}, {transform_indices = @transform_1, window_bounds = array<i64: 8, 16, 16>}]} {
    %c0 = arith.constant 0 : index
    %c0_0 = arith.constant 0 : index
    %c0_1 = arith.constant 0 : index
    %0 = vector.load %arg1[%c0, %c0_0, %c0_1] : memref<8x16x16xf32, #tpu.memory_space<vmem>>, vector<8x16x16xf32>
    %c0_2 = arith.constant 0 : index
    %c0_3 = arith.constant 0 : index
    %c0_4 = arith.constant 0 : index
    %1 = vector.load %arg3[%c0_2, %c0_3, %c0_4] : memref<8x16x16xf32, #tpu.memory_space<vmem>>, vector<8x16x16xf32>
    tpu.vector_store %arg3[%c0_2, %c0_3, %c0_4], %0 {strides = array<i32>} : memref<8x16x16xf32, #tpu.memory_space<vmem>>, vector<8x16x16xf32>,
    %c0_5 = arith.constant 0 : index
    %c0_6 = arith.constant 0 : index
    %c1 = arith.constant 1 : index
    %2 = vector.load %arg3[%c0_5, %c0_6, %c1] : memref<8x16x16xf32, #tpu.memory_space<vmem>>, vector<8x16x15xf32>
    %3 = vector.extract_strided_slice %0 {offsets = [0, 0, 0], sizes = [8, 16, 15], strides = [1, 1, 1]} : vector<8x16x16xf32> to vector<8x16x15xf32>
    %4 = arith.addf %2, %3 : vector<8x16x15xf32>
    %c0_7 = arith.constant 0 : index
    %c0_8 = arith.constant 0 : index
    %c1_9 = arith.constant 1 : index
    %5 = vector.load %arg3[%c0_7, %c0_8, %c1_9] : memref<8x16x16xf32, #tpu.memory_space<vmem>>, vector<8x16x15xf32>
    tpu.vector_store %arg3[%c0_7, %c0_8, %c1_9], %4 {strides = array<i32>} : memref<8x16x16xf32, #tpu.memory_space<vmem>>, vector<8x16x15xf32>,
    %c0_10 = arith.constant 0 : index
    %c0_11 = arith.constant 0 : index
    %c0_12 = arith.constant 0 : index
    %6 = vector.load %arg3[%c0_10, %c0_11, %c0_12] : memref<8x16x16xf32, #tpu.memory_space<vmem>>, vector<8x16x15xf32>
    %7 = vector.extract_strided_slice %0 {offsets = [0, 0, 1], sizes = [8, 16, 15], strides = [1, 1, 1]} : vector<8x16x16xf32> to vector<8x16x15xf32>
    %8 = arith.addf %6, %7 : vector<8x16x15xf32>
    %c0_13 = arith.constant 0 : index
    %c0_14 = arith.constant 0 : index
    %c0_15 = arith.constant 0 : index
    %9 = vector.load %arg3[%c0_13, %c0_14, %c0_15] : memref<8x16x16xf32, #tpu.memory_space<vmem>>, vector<8x16x15xf32>
    tpu.vector_store %arg3[%c0_13, %c0_14, %c0_15], %8 {strides = array<i32>} : memref<8x16x16xf32, #tpu.memory_space<vmem>>, vector<8x16x15xf32>,
    %c0_16 = arith.constant 0 : index
    %c0_17 = arith.constant 0 : index
    %c2 = arith.constant 2 : index
    %10 = vector.load %arg3[%c0_16, %c0_17, %c2] : memref<8x16x16xf32, #tpu.memory_space<vmem>>, vector<8x16x14xf32>
    %11 = vector.extract_strided_slice %0 {offsets = [0, 0, 0], sizes = [8, 16, 14], strides = [1, 1, 1]} : vector<8x16x16xf32> to vector<8x16x14xf32>
    %12 = arith.addf %10, %11 : vector<8x16x14xf32>
    %c0_18 = arith.constant 0 : index
    %c0_19 = arith.constant 0 : index
    %c2_20 = arith.constant 2 : index
    %13 = vector.load %arg3[%c0_18, %c0_19, %c2_20] : memref<8x16x16xf32, #tpu.memory_space<vmem>>, vector<8x16x14xf32>
    tpu.vector_store %arg3[%c0_18, %c0_19, %c2_20], %12 {strides = array<i32>} : memref<8x16x16xf32, #tpu.memory_space<vmem>>, vector<8x16x14xf32>,
    %c0_21 = arith.constant 0 : index
    %c0_22 = arith.constant 0 : index
    %c0_23 = arith.constant 0 : index
    %14 = vector.load %arg3[%c0_21, %c0_22, %c0_23] : memref<8x16x16xf32, #tpu.memory_space<vmem>>, vector<8x16x14xf32>
    %15 = vector.extract_strided_slice %0 {offsets = [0, 0, 2], sizes = [8, 16, 14], strides = [1, 1, 1]} : vector<8x16x16xf32> to vector<8x16x14xf32>
    %16 = arith.addf %14, %15 : vector<8x16x14xf32>
    %c0_24 = arith.constant 0 : index
    %c0_25 = arith.constant 0 : index
    %c0_26 = arith.constant 0 : index
    %17 = vector.load %arg3[%c0_24, %c0_25, %c0_26] : memref<8x16x16xf32, #tpu.memory_space<vmem>>, vector<8x16x14xf32>
    tpu.vector_store %arg3[%c0_24, %c0_25, %c0_26], %16 {strides = array<i32>} : memref<8x16x16xf32, #tpu.memory_space<vmem>>, vector<8x16x14xf32>,
    %c0_27 = arith.constant 0 : index
    %c0_28 = arith.constant 0 : index
    %c0_29 = arith.constant 0 : index
    %18 = vector.load %arg3[%c0_27, %c0_28, %c0_29] : memref<8x16x16xf32, #tpu.memory_space<vmem>>, vector<8x16x16xf32>
    %c0_30 = arith.constant 0 : index
    %c0_31 = arith.constant 0 : index
    %c0_32 = arith.constant 0 : index
    %19 = vector.load %arg4[%c0_30, %c0_31, %c0_32] : memref<8x16x16xf32, #tpu.memory_space<vmem>>, vector<8x16x16xf32>
    tpu.vector_store %arg4[%c0_30, %c0_31, %c0_32], %18 {strides = array<i32>} : memref<8x16x16xf32, #tpu.memory_space<vmem>>, vector<8x16x16xf32>,
    %c0_33 = arith.constant 0 : index
    %c1_34 = arith.constant 1 : index
    %c0_35 = arith.constant 0 : index
    %20 = vector.load %arg4[%c0_33, %c1_34, %c0_35] : memref<8x16x16xf32, #tpu.memory_space<vmem>>, vector<8x15x16xf32>
    %21 = vector.extract_strided_slice %18 {offsets = [0, 0, 0], sizes = [8, 15, 16], strides = [1, 1, 1]} : vector<8x16x16xf32> to vector<8x15x16xf32>
    %22 = arith.addf %20, %21 : vector<8x15x16xf32>
    %c0_36 = arith.constant 0 : index
    %c1_37 = arith.constant 1 : index
    %c0_38 = arith.constant 0 : index
    %23 = vector.load %arg4[%c0_36, %c1_37, %c0_38] : memref<8x16x16xf32, #tpu.memory_space<vmem>>, vector<8x15x16xf32>
    tpu.vector_store %arg4[%c0_36, %c1_37, %c0_38], %22 {strides = array<i32>} : memref<8x16x16xf32, #tpu.memory_space<vmem>>, vector<8x15x16xf32>,
    %c0_39 = arith.constant 0 : index
    %c0_40 = arith.constant 0 : index
    %c0_41 = arith.constant 0 : index
    %24 = vector.load %arg4[%c0_39, %c0_40, %c0_41] : memref<8x16x16xf32, #tpu.memory_space<vmem>>, vector<8x15x16xf32>
    %25 = vector.extract_strided_slice %18 {offsets = [0, 1, 0], sizes = [8, 15, 16], strides = [1, 1, 1]} : vector<8x16x16xf32> to vector<8x15x16xf32>
    %26 = arith.addf %24, %25 : vector<8x15x16xf32>
    %c0_42 = arith.constant 0 : index
    %c0_43 = arith.constant 0 : index
    %c0_44 = arith.constant 0 : index
    %27 = vector.load %arg4[%c0_42, %c0_43, %c0_44] : memref<8x16x16xf32, #tpu.memory_space<vmem>>, vector<8x15x16xf32>
    tpu.vector_store %arg4[%c0_42, %c0_43, %c0_44], %26 {strides = array<i32>} : memref<8x16x16xf32, #tpu.memory_space<vmem>>, vector<8x15x16xf32>,
    %c0_45 = arith.constant 0 : index
    %c2_46 = arith.constant 2 : index
    %c0_47 = arith.constant 0 : index
    %28 = vector.load %arg4[%c0_45, %c2_46, %c0_47] : memref<8x16x16xf32, #tpu.memory_space<vmem>>, vector<8x14x16xf32>
    %29 = vector.extract_strided_slice %18 {offsets = [0, 0, 0], sizes = [8, 14, 16], strides = [1, 1, 1]} : vector<8x16x16xf32> to vector<8x14x16xf32>
    %30 = arith.addf %28, %29 : vector<8x14x16xf32>
    %c0_48 = arith.constant 0 : index
    %c2_49 = arith.constant 2 : index
    %c0_50 = arith.constant 0 : index
    %31 = vector.load %arg4[%c0_48, %c2_49, %c0_50] : memref<8x16x16xf32, #tpu.memory_space<vmem>>, vector<8x14x16xf32>
    tpu.vector_store %arg4[%c0_48, %c2_49, %c0_50], %30 {strides = array<i32>} : memref<8x16x16xf32, #tpu.memory_space<vmem>>, vector<8x14x16xf32>,
    %c0_51 = arith.constant 0 : index
    %c0_52 = arith.constant 0 : index
    %c0_53 = arith.constant 0 : index
    %32 = vector.load %arg4[%c0_51, %c0_52, %c0_53] : memref<8x16x16xf32, #tpu.memory_space<vmem>>, vector<8x14x16xf32>
    %33 = vector.extract_strided_slice %18 {offsets = [0, 2, 0], sizes = [8, 14, 16], strides = [1, 1, 1]} : vector<8x16x16xf32> to vector<8x14x16xf32>
    %34 = arith.addf %32, %33 : vector<8x14x16xf32>
    %c0_54 = arith.constant 0 : index
    %c0_55 = arith.constant 0 : index
    %c0_56 = arith.constant 0 : index
    %35 = vector.load %arg4[%c0_54, %c0_55, %c0_56] : memref<8x16x16xf32, #tpu.memory_space<vmem>>, vector<8x14x16xf32>
    tpu.vector_store %arg4[%c0_54, %c0_55, %c0_56], %34 {strides = array<i32>} : memref<8x16x16xf32, #tpu.memory_space<vmem>>, vector<8x14x16xf32>,
    %cst = arith.constant 5.000000e-01 : f32
    %36 = vector.broadcast %cst : f32 to vector<8x16x16xf32>
    %37 = arith.mulf %36, %0 : vector<8x16x16xf32>
    %cst_57 = arith.constant 5.000000e-01 : f32
    %38 = vector.broadcast %cst_57 : f32 to vector<8x16x16xf32>
    %39 = arith.addf %38, %37 : vector<8x16x16xf32>
    %c0_58 = arith.constant 0 : index
    %c0_59 = arith.constant 0 : index
    %c0_60 = arith.constant 0 : index
    %40 = vector.load %arg4[%c0_58, %c0_59, %c0_60] : memref<8x16x16xf32, #tpu.memory_space<vmem>>, vector<8x16x16xf32>
    %cst_61 = arith.constant 2.000000e-02 : f32
    %41 = vector.broadcast %cst_61 : f32 to vector<8x16x16xf32>
    %42 = arith.mulf %41, %40 : vector<8x16x16xf32>
    %43 = arith.subf %39, %42 : vector<8x16x16xf32>
    %c0_62 = arith.constant 0 : index
    %c0_63 = arith.constant 0 : index
    %c0_64 = arith.constant 0 : index
    %44 = vector.load %arg2[%c0_62, %c0_63, %c0_64] : memref<8x16x16xf32, #tpu.memory_space<vmem>>, vector<8x16x16xf32>
    tpu.vector_store %arg2[%c0_62, %c0_63, %c0_64], %43 {strides = array<i32>} : memref<8x16x16xf32, #tpu.memory_space<vmem>>, vector<8x16x16xf32>,
    return
  }
  func.func @transform_0(%arg0: i32) -> (i32, i32, i32) {
    %c0_i32 = arith.constant 0 : i32
    %c0_i32_0 = arith.constant 0 : i32
    %c0_i32_1 = arith.constant 0 : i32
    return %arg0, %c0_i32, %c0_i32_0 : i32, i32, i32
  }
  func.func @transform_1(%arg0: i32) -> (i32, i32, i32) {
    %c0_i32 = arith.constant 0 : i32
    %c0_i32_0 = arith.constant 0 : i32
    %c0_i32_1 = arith.constant 0 : i32
    return %arg0, %c0_i32, %c0_i32_0 : i32, i32, i32
  }
}

</mosaic_0001>

<bundles_post_ra>
// kernel: tpu_custom_call.1
= control target key start
LH: loop header
LB: loop body
LE: loop exit
PB: predicated region body
PF: predicated region fallthrough
CT: control target
= control target key end

     0   :  { %6 = vsyncpa [#allocation5], 0  ;;  %s1446_s0 = inlined_call_operand.hbm [shape: f32[8,16,16], index: 0, kind: input, shape index: {}]   ;;  %s1447_s1 = inlined_call_operand.hbm [shape: f32[8,16,16], index: 1, kind: output, shape index: {}]  }
   0x1   :  { %7 = vsyncpa [#allocation6], 0  ;;  %s949_s6 = smov [#allocation4]  }
   0x2   :  { %s13_s7 = sshll.u32 %s949_s6, 4  ;;  %s14_s7 = int_to_ptr.vmem [resolvable:$true] %s13_s7 }
   0x3   :  { %s913_s8 = scalar_lea.vmem %s14_s7, 2048  ;;  %p918_p1 = scmp.lt.s32.totalorder %s14_s7, %s14_s7 }
   0x4   :  { %p914_p0 = scmp.ne.s32.totalorder %s14_s7, %s913_s8  ;;  %p919_p2 = scmp.lt.s32.totalorder %s913_s8, %s913_s8 }
   0x6   :  { %p920_p3 = por %p919_p2, %p918_p1 }
   0x8   :  { %p921_p4 = pnand %p920_p3, %p914_p0 }
   0xa   :  { %924 = shalt.err (!%p921_p4)
}
   0xb   :  { %s950_s9 = smov 128   ;;  %s951_s10 = smov 8  }
   0xc   :  { %19 = dma.hbm_to_vmem [thread:$0]  %s1446_s0, 2048, %s14_s7, [#allocation5], %s950_s9, %s950_s9, %s951_s10  }
   0xd   :  { %945 = dma.done.wait [#allocation5], 2048  }
   0xe   :  { %946 = vsyncadd [#allocation5], 4294965248  ;;  %vm39_vm0 = vcmask 130048   ;;  %v973_v0 = vld [vmem:[#allocation4 + $0x10] sm:$0xff]  ;;  %v975_v1 = vld [vmem:[#allocation4] sm:$0xff]  ;;  %s952_s13 = smov 1  }
   0xf   :  { %v977_v2 = vld [vmem:[#allocation4 + $0x18] sm:$0xff]  ;;  %92 = vrot.lane.b32.xlu1 %v973_v0, %s952_s13  ;;  %88 = vrot.lane.b32.xlu0 %v975_v1, %s952_s13  ;;  %v983_v3 = vld [vmem:[#allocation4 + $0x8] sm:$0xff]  ;;  %v987_v5 = vld [vmem:[#allocation4 + $0x20] sm:$0xff]  ;;  %42 = vst.msk [vmem:[#allocation2 + $0x10] sm:$0xff] %vm39_vm0, %v973_v0  ;;  %s953_s0 = smov 127   ;;  %s954_s14 = smov 2  }
  0x10   :  { %v985_v4 = vld [vmem:[#allocation4 + $0x28] sm:$0xff]  ;;  %40 = vst.msk [vmem:[#allocation2] sm:$0xff] %vm39_vm0, %v975_v1  ;;  %43 = vst.msk [vmem:[#allocation2 + $0x18] sm:$0xff] %vm39_vm0, %v977_v2  ;;  %v995_v6 = vld [vmem:[#allocation4 + $0x38] sm:$0xff]  ;;  %s955_s15 = smov 126   ;;  %vm152_vm1 = vcmask 130056  }
  0x11   :  { %v997_v7 = vld [vmem:[#allocation4 + $0x30] sm:$0xff]  ;;  %v999_v8 = vld [vmem:[#allocation4 + $0x48] sm:$0xff]  ;;  %41 = vst.msk [vmem:[#allocation2 + $0x8] sm:$0xff] %vm39_vm0, %v983_v3  ;;  %44 = vst.msk [vmem:[#allocation2 + $0x20] sm:$0xff] %vm39_vm0, %v987_v5  ;;  %vm249_vm2 = vcmask 121856   ;;  %vm346_vm3 = vcmask 130064  }
  0x12   :  { %45 = vst.msk [vmem:[#allocation2 + $0x28] sm:$0xff] %vm39_vm0, %v985_v4  ;;  %v1007_v9 = vld [vmem:[#allocation4 + $0x40] sm:$0xff]  ;;  %v1009_v10 = vld [vmem:[#allocation4 + $0x58] sm:$0xff]  ;;  %46 = vst.msk [vmem:[#allocation2 + $0x30] sm:$0xff] %vm39_vm0, %v997_v7  ;;  %vm443_vm4 = vcmask 113664   ;;  %vm525_vm5 = vcmask 129024  }
  0x13   :  { %47 = vst.msk [vmem:[#allocation2 + $0x38] sm:$0xff] %vm39_vm0, %v995_v6  ;;  %49 = vst.msk [vmem:[#allocation2 + $0x48] sm:$0xff] %vm39_vm0, %v999_v8  ;;  %v1017_v11 = vld [vmem:[#allocation4 + $0x50] sm:$0xff]  ;;  %v1019_v12 = vld [vmem:[#allocation4 + $0x68] sm:$0xff]  ;;  %94 = vrot.lane.b32.xlu1 %v977_v2, %s952_s13  ;;  %90 = vrot.lane.b32.xlu0 %v983_v3, %s952_s13  ;;  %vm573_vm6 = vcmask 1046528   ;;  %vm679_vm7 = vcmask 128000  }
  0x14   :  { %48 = vst.msk [vmem:[#allocation2 + $0x40] sm:$0xff] %vm39_vm0, %v1007_v9  ;;  %51 = vst.msk [vmem:[#allocation2 + $0x58] sm:$0xff] %vm39_vm0, %v1009_v10  ;;  %v1029_v13 = vld [vmem:[#allocation4 + $0x60] sm:$0xff]  ;;  %v1031_v14 = vld [vmem:[#allocation4 + $0x78] sm:$0xff]  ;;  %vm711_vm8 = vcmask 1045504   ;;  %s956_s16 = smov [#allocation7]  }
  0x15   :  { %50 = vst.msk [vmem:[#allocation2 + $0x50] sm:$0xff] %vm39_vm0, %v1017_v11  ;;  %53 = vst.msk [vmem:[#allocation2 + $0x68] sm:$0xff] %vm39_vm0, %v1019_v12  ;;  %v1037_v15 = vld [vmem:[#allocation4 + $0x70] sm:$0xff]  ;;  %s885_s17 = sshll.u32 %s956_s16, 4  ;;  %s886_s17 = int_to_ptr.vmem [resolvable:$true] %s885_s17 }
  0x16   :  { %52 = vst.msk [vmem:[#allocation2 + $0x60] sm:$0xff] %vm39_vm0, %v1029_v13  ;;  %55 = vst.msk [vmem:[#allocation2 + $0x78] sm:$0xff] %vm39_vm0, %v1031_v14  ;;  %v58_v16 = vld [vmem:[#allocation2 + $0x10] sm:$0xff]  ;;  %s925_s18 = scalar_lea.vmem %s886_s17, 2048  ;;  %p930_p6 = scmp.lt.s32.totalorder %s886_s17, %s886_s17 }
  0x17   :  { %54 = vst.msk [vmem:[#allocation2 + $0x70] sm:$0xff] %vm39_vm0, %v1037_v15  ;;  %98 = vrot.lane.b32.xlu1 %v985_v4, %s952_s13  ;;  %96 = vrot.lane.b32.xlu0 %v987_v5, %s952_s13  ;;  %v56_v17 = vld [vmem:[#allocation2] sm:$0xff]  ;;  %v59_v22 = vld [vmem:[#allocation2 + $0x18] sm:$0xff]  ;;  %p926_p5 = scmp.ne.s32.totalorder %s886_s17, %s925_s18  ;;  %p931_p7 = scmp.lt.s32.totalorder %s925_s18, %s925_s18 }
  0x18   :  { %v57_v23 = vld [vmem:[#allocation2 + $0x8] sm:$0xff]  ;;  %v60_v29 = vld [vmem:[#allocation2 + $0x20] sm:$0xff] }
  0x19   :  { %v61_v28 = vld [vmem:[#allocation2 + $0x28] sm:$0xff]  ;;  %v62_v35 = vld [vmem:[#allocation2 + $0x30] sm:$0xff]  ;;  %p932_p8 = por %p931_p7, %p930_p6 }
  0x1a   :  { %v63_v34 = vld [vmem:[#allocation2 + $0x38] sm:$0xff]  ;;  %v65_v40 = vld [vmem:[#allocation2 + $0x48] sm:$0xff] }
  0x1b   :  { %102 = vrot.lane.b32.xlu1 %v995_v6, %s952_s13  ;;  %100 = vrot.lane.b32.xlu0 %v997_v7, %s952_s13  ;;  %v64_v41 = vld [vmem:[#allocation2 + $0x40] sm:$0xff]  ;;  %v67_v46 = vld [vmem:[#allocation2 + $0x58] sm:$0xff]  ;;  %p933_p9 = pnand %p932_p8, %p926_p5 }
  0x1c   :  { %v66_v47 = vld [vmem:[#allocation2 + $0x50] sm:$0xff]  ;;  %v69_v52 = vld [vmem:[#allocation2 + $0x68] sm:$0xff] }
  0x1d   :  { %v68_v53 = vld [vmem:[#allocation2 + $0x60] sm:$0xff]  ;;  %v71_v58 = vld [vmem:[#allocation2 + $0x78] sm:$0xff] }
  0x1e   :  { %v70_v59 = vld [vmem:[#allocation2 + $0x70] sm:$0xff] }
  0x1f   :  { %106 = vrot.lane.b32.xlu1 %v999_v8, %s952_s13  ;;  %104 = vrot.lane.b32.xlu0 %v1007_v9, %s952_s13 }
  0x23   :  { %110 = vrot.lane.b32.xlu1 %v1009_v10, %s952_s13  ;;  %108 = vrot.lane.b32.xlu0 %v1017_v11, %s952_s13 }
  0x27   :  { %114 = vrot.lane.b32.xlu1 %v1019_v12, %s952_s13  ;;  %112 = vrot.lane.b32.xlu0 %v1029_v13, %s952_s13 }
  0x2b   :  { %118 = vrot.lane.b32.xlu1 %v1031_v14, %s952_s13  ;;  %116 = vrot.lane.b32.xlu0 %v1037_v15, %s952_s13 }
  0x2f   :  { %187 = vrot.lane.b32.xlu1 %v983_v3, %s953_s0  ;;  %185 = vrot.lane.b32.xlu0 %v975_v1, %s953_s0 }
  0x33   :  { %191 = vrot.lane.b32.xlu1 %v977_v2, %s953_s0  ;;  %189 = vrot.lane.b32.xlu0 %v973_v0, %s953_s0 }
  0x37   :  { %195 = vrot.lane.b32.xlu1 %v985_v4, %s953_s0  ;;  %193 = vrot.lane.b32.xlu0 %v987_v5, %s953_s0 }
  0x3b   :  { %199 = vrot.lane.b32.xlu1 %v995_v6, %s953_s0  ;;  %197 = vrot.lane.b32.xlu0 %v997_v7, %s953_s0 }
  0x3f   :  { %203 = vrot.lane.b32.xlu1 %v999_v8, %s953_s0  ;;  %201 = vrot.lane.b32.xlu0 %v1007_v9, %s953_s0 }
  0x43   :  { %207 = vrot.lane.b32.xlu1 %v1009_v10, %s953_s0  ;;  %205 = vrot.lane.b32.xlu0 %v1017_v11, %s953_s0 }
  0x47   :  { %211 = vrot.lane.b32.xlu1 %v1019_v12, %s953_s0  ;;  %209 = vrot.lane.b32.xlu0 %v1029_v13, %s953_s0 }
  0x4b   :  { %215 = vrot.lane.b32.xlu1 %v1031_v14, %s953_s0  ;;  %213 = vrot.lane.b32.xlu0 %v1037_v15, %s953_s0 }
  0x4f   :  { %284 = vrot.lane.b32.xlu1 %v983_v3, %s954_s14  ;;  %282 = vrot.lane.b32.xlu0 %v975_v1, %s954_s14 }
  0x53   :  { %288 = vrot.lane.b32.xlu1 %v977_v2, %s954_s14  ;;  %286 = vrot.lane.b32.xlu0 %v973_v0, %s954_s14 }
  0x57   :  { %292 = vrot.lane.b32.xlu1 %v985_v4, %s954_s14  ;;  %290 = vrot.lane.b32.xlu0 %v987_v5, %s954_s14 }
  0x5b   :  { %296 = vrot.lane.b32.xlu1 %v995_v6, %s954_s14  ;;  %294 = vrot.lane.b32.xlu0 %v997_v7, %s954_s14 }
  0x5f   :  { %300 = vrot.lane.b32.xlu1 %v999_v8, %s954_s14  ;;  %298 = vrot.lane.b32.xlu0 %v1007_v9, %s954_s14 }
  0x63   :  { %304 = vrot.lane.b32.xlu1 %v1009_v10, %s954_s14  ;;  %302 = vrot.lane.b32.xlu0 %v1017_v11, %s954_s14 }
  0x67   :  { %308 = vrot.lane.b32.xlu1 %v1019_v12, %s954_s14  ;;  %306 = vrot.lane.b32.xlu0 %v1029_v13, %s954_s14 }
  0x6b   :  { %312 = vrot.lane.b32.xlu1 %v1031_v14, %s954_s14  ;;  %310 = vrot.lane.b32.xlu0 %v1037_v15, %s954_s14 }
  0x6f   :  { %381 = vrot.lane.b32.xlu1 %v983_v3, %s955_s15  ;;  %379 = vrot.lane.b32.xlu0 %v975_v1, %s955_s15 }
  0x73   :  { %385 = vrot.lane.b32.xlu1 %v977_v2, %s955_s15  ;;  %383 = vrot.lane.b32.xlu0 %v973_v0, %s955_s15 }
  0x77   :  { %389 = vrot.lane.b32.xlu1 %v985_v4, %s955_s15  ;;  %387 = vrot.lane.b32.xlu0 %v987_v5, %s955_s15 }
  0x7b   :  { %393 = vrot.lane.b32.xlu1 %v995_v6, %s955_s15  ;;  %391 = vrot.lane.b32.xlu0 %v997_v7, %s955_s15 }
  0x7f   :  { %397 = vrot.lane.b32.xlu1 %v999_v8, %s955_s15  ;;  %395 = vrot.lane.b32.xlu0 %v1007_v9, %s955_s15 }
  0x81   :  { %v93_v18 = vpop.permute.xlu1 %92  ;;  %v89_v19 = vpop.permute.xlu0 %88 }
  0x82   :  { %v138_v20 = vadd.f32 %v93_v18, %v58_v16  ;;  %v136_v21 = vadd.f32 %v89_v19, %v56_v17 }
  0x83   :  { %401 = vrot.lane.b32.xlu1 %v1009_v10, %s955_s15  ;;  %399 = vrot.lane.b32.xlu0 %v1017_v11, %s955_s15 }
  0x84   :  { %155 = vst.msk [vmem:[#allocation2 + $0x10] sm:$0xff] %vm152_vm1, %v138_v20  ;;  %153 = vst.msk [vmem:[#allocation2] sm:$0xff] %vm152_vm1, %v136_v21 }
  0x85   :  { %v95_v24 = vpop.permute.xlu1 %94  ;;  %v91_v25 = vpop.permute.xlu0 %90 }
  0x86   :  { %v139_v26 = vadd.f32 %v95_v24, %v59_v22  ;;  %v137_v27 = vadd.f32 %v91_v25, %v57_v23 }
  0x87   :  { %405 = vrot.lane.b32.xlu1 %v1019_v12, %s955_s15  ;;  %403 = vrot.lane.b32.xlu0 %v1029_v13, %s955_s15 }
  0x88   :  { %156 = vst.msk [vmem:[#allocation2 + $0x18] sm:$0xff] %vm152_vm1, %v139_v26  ;;  %154 = vst.msk [vmem:[#allocation2 + $0x8] sm:$0xff] %vm152_vm1, %v137_v27 }
  0x89   :  { %v99_v30 = vpop.permute.xlu1 %98  ;;  %v97_v31 = vpop.permute.xlu0 %96 }
  0x8a   :  { %v141_v32 = vadd.f32 %v99_v30, %v61_v28  ;;  %v140_v33 = vadd.f32 %v97_v31, %v60_v29 }
  0x8b   :  { %409 = vrot.lane.b32.xlu1 %v1031_v14, %s955_s15  ;;  %407 = vrot.lane.b32.xlu0 %v1037_v15, %s955_s15  ;;  %v169_v19 = vld [vmem:[#allocation2] sm:$0xff]  ;;  %v171_v24 = vld [vmem:[#allocation2 + $0x10] sm:$0xff] }
  0x8c   :  { %158 = vst.msk [vmem:[#allocation2 + $0x28] sm:$0xff] %vm152_vm1, %v141_v32  ;;  %157 = vst.msk [vmem:[#allocation2 + $0x20] sm:$0xff] %vm152_vm1, %v140_v33 }
  0x8d   :  { %v103_v36 = vpop.permute.xlu1 %102  ;;  %v101_v37 = vpop.permute.xlu0 %100 }
  0x8e   :  { %v143_v38 = vadd.f32 %v103_v36, %v63_v34  ;;  %v142_v39 = vadd.f32 %v101_v37, %v62_v35 }
  0x8f   :  { %v170_v17 = vld [vmem:[#allocation2 + $0x8] sm:$0xff]  ;;  %v172_v22 = vld [vmem:[#allocation2 + $0x18] sm:$0xff] }
  0x90   :  { %160 = vst.msk [vmem:[#allocation2 + $0x38] sm:$0xff] %vm152_vm1, %v143_v38  ;;  %159 = vst.msk [vmem:[#allocation2 + $0x30] sm:$0xff] %vm152_vm1, %v142_v39 }
  0x91   :  { %v107_v42 = vpop.permute.xlu1 %106  ;;  %v105_v43 = vpop.permute.xlu0 %104 }
  0x92   :  { %v145_v44 = vadd.f32 %v107_v42, %v65_v40  ;;  %v144_v45 = vadd.f32 %v105_v43, %v64_v41 }
  0x93   :  { %v174_v28 = vld [vmem:[#allocation2 + $0x28] sm:$0xff]  ;;  %v173_v30 = vld [vmem:[#allocation2 + $0x20] sm:$0xff] }
  0x94   :  { %162 = vst.msk [vmem:[#allocation2 + $0x48] sm:$0xff] %vm152_vm1, %v145_v44  ;;  %161 = vst.msk [vmem:[#allocation2 + $0x40] sm:$0xff] %vm152_vm1, %v144_v45 }
  0x95   :  { %v111_v48 = vpop.permute.xlu1 %110  ;;  %v109_v49 = vpop.permute.xlu0 %108 }
  0x96   :  { %v147_v50 = vadd.f32 %v111_v48, %v67_v46  ;;  %v146_v51 = vadd.f32 %v109_v49, %v66_v47 }
  0x97   :  { %v176_v34 = vld [vmem:[#allocation2 + $0x38] sm:$0xff]  ;;  %v175_v36 = vld [vmem:[#allocation2 + $0x30] sm:$0xff] }
  0x98   :  { %164 = vst.msk [vmem:[#allocation2 + $0x58] sm:$0xff] %vm152_vm1, %v147_v50  ;;  %163 = vst.msk [vmem:[#allocation2 + $0x50] sm:$0xff] %vm152_vm1, %v146_v51 }
  0x99   :  { %v115_v54 = vpop.permute.xlu1 %114  ;;  %v113_v55 = vpop.permute.xlu0 %112 }
  0x9a   :  { %v149_v56 = vadd.f32 %v115_v54, %v69_v52  ;;  %v148_v57 = vadd.f32 %v113_v55, %v68_v53 }
  0x9b   :  { %v178_v40 = vld [vmem:[#allocation2 + $0x48] sm:$0xff]  ;;  %v177_v42 = vld [vmem:[#allocation2 + $0x40] sm:$0xff] }
  0x9c   :  { %166 = vst.msk [vmem:[#allocation2 + $0x68] sm:$0xff] %vm152_vm1, %v149_v56  ;;  %165 = vst.msk [vmem:[#allocation2 + $0x60] sm:$0xff] %vm152_vm1, %v148_v57 }
  0x9d   :  { %v119_v60 = vpop.permute.xlu1 %118  ;;  %v117_v61 = vpop.permute.xlu0 %116 }
  0x9e   :  { %v151_v62 = vadd.f32 %v119_v60, %v71_v58  ;;  %v150_v63 = vadd.f32 %v117_v61, %v70_v59 }
  0x9f   :  { %v180_v46 = vld [vmem:[#allocation2 + $0x58] sm:$0xff]  ;;  %v179_v48 = vld [vmem:[#allocation2 + $0x50] sm:$0xff] }
  0xa0   :  { %168 = vst.msk [vmem:[#allocation2 + $0x78] sm:$0xff] %vm152_vm1, %v151_v62  ;;  %167 = vst.msk [vmem:[#allocation2 + $0x70] sm:$0xff] %vm152_vm1, %v150_v63 }
  0xa1   :  { %v188_v16 = vpop.permute.xlu1 %187  ;;  %v186_v18 = vpop.permute.xlu0 %185 }
  0xa2   :  { %v234_v20 = vadd.f32 %v188_v16, %v170_v17  ;;  %v233_v21 = vadd.f32 %v186_v18, %v169_v19 }
  0xa3   :  { %v182_v52 = vld [vmem:[#allocation2 + $0x68] sm:$0xff]  ;;  %v181_v54 = vld [vmem:[#allocation2 + $0x60] sm:$0xff] }
  0xa4   :  { %251 = vst.msk [vmem:[#allocation2 + $0x8] sm:$0xff] %vm249_vm2, %v234_v20  ;;  %250 = vst.msk [vmem:[#allocation2] sm:$0xff] %vm249_vm2, %v233_v21 }
  0xa5   :  { %v192_v23 = vpop.permute.xlu1 %191  ;;  %v190_v25 = vpop.permute.xlu0 %189 }
  0xa6   :  { %v236_v26 = vadd.f32 %v192_v23, %v172_v22  ;;  %v235_v27 = vadd.f32 %v190_v25, %v171_v24 }
  0xa7   :  { %v184_v58 = vld [vmem:[#allocation2 + $0x78] sm:$0xff]  ;;  %v183_v60 = vld [vmem:[#allocation2 + $0x70] sm:$0xff] }
  0xa8   :  { %253 = vst.msk [vmem:[#allocation2 + $0x18] sm:$0xff] %vm249_vm2, %v236_v26  ;;  %252 = vst.msk [vmem:[#allocation2 + $0x10] sm:$0xff] %vm249_vm2, %v235_v27 }
  0xa9   :  { %v196_v29 = vpop.permute.xlu1 %195  ;;  %v194_v31 = vpop.permute.xlu0 %193 }
  0xaa   :  { %v238_v32 = vadd.f32 %v196_v29, %v174_v28  ;;  %v237_v33 = vadd.f32 %v194_v31, %v173_v30 }
  0xab   :  { %v267_v17 = vld [vmem:[#allocation2 + $0x8] sm:$0xff]  ;;  %v266_v19 = vld [vmem:[#allocation2] sm:$0xff] }
  0xac   :  { %255 = vst.msk [vmem:[#allocation2 + $0x28] sm:$0xff] %vm249_vm2, %v238_v32  ;;  %254 = vst.msk [vmem:[#allocation2 + $0x20] sm:$0xff] %vm249_vm2, %v237_v33 }
  0xad   :  { %v200_v35 = vpop.permute.xlu1 %199  ;;  %v198_v37 = vpop.permute.xlu0 %197 }
  0xae   :  { %v240_v38 = vadd.f32 %v200_v35, %v176_v34  ;;  %v239_v39 = vadd.f32 %v198_v37, %v175_v36 }
  0xaf   :  { %v269_v22 = vld [vmem:[#allocation2 + $0x18] sm:$0xff]  ;;  %v268_v24 = vld [vmem:[#allocation2 + $0x10] sm:$0xff] }
  0xb0   :  { %257 = vst.msk [vmem:[#allocation2 + $0x38] sm:$0xff] %vm249_vm2, %v240_v38  ;;  %256 = vst.msk [vmem:[#allocation2 + $0x30] sm:$0xff] %vm249_vm2, %v239_v39 }
  0xb1   :  { %v204_v41 = vpop.permute.xlu1 %203  ;;  %v202_v43 = vpop.permute.xlu0 %201 }
  0xb2   :  { %v242_v44 = vadd.f32 %v204_v41, %v178_v40  ;;  %v241_v45 = vadd.f32 %v202_v43, %v177_v42 }
  0xb3   :  { %v271_v28 = vld [vmem:[#allocation2 + $0x28] sm:$0xff]  ;;  %v270_v30 = vld [vmem:[#allocation2 + $0x20] sm:$0xff] }
  0xb4   :  { %259 = vst.msk [vmem:[#allocation2 + $0x48] sm:$0xff] %vm249_vm2, %v242_v44  ;;  %258 = vst.msk [vmem:[#allocation2 + $0x40] sm:$0xff] %vm249_vm2, %v241_v45 }
  0xb5   :  { %v208_v47 = vpop.permute.xlu1 %207  ;;  %v206_v49 = vpop.permute.xlu0 %205 }
  0xb6   :  { %v244_v50 = vadd.f32 %v208_v47, %v180_v46  ;;  %v243_v51 = vadd.f32 %v206_v49, %v179_v48 }
  0xb7   :  { %v273_v34 = vld [vmem:[#allocation2 + $0x38] sm:$0xff]  ;;  %v272_v36 = vld [vmem:[#allocation2 + $0x30] sm:$0xff] }
  0xb8   :  { %261 = vst.msk [vmem:[#allocation2 + $0x58] sm:$0xff] %vm249_vm2, %v244_v50  ;;  %260 = vst.msk [vmem:[#allocation2 + $0x50] sm:$0xff] %vm249_vm2, %v243_v51 }
  0xb9   :  { %v212_v53 = vpop.permute.xlu1 %211  ;;  %v210_v55 = vpop.permute.xlu0 %209 }
  0xba   :  { %v246_v56 = vadd.f32 %v212_v53, %v182_v52  ;;  %v245_v57 = vadd.f32 %v210_v55, %v181_v54 }
  0xbb   :  { %v275_v40 = vld [vmem:[#allocation2 + $0x48] sm:$0xff]  ;;  %v274_v42 = vld [vmem:[#allocation2 + $0x40] sm:$0xff] }
  0xbc   :  { %263 = vst.msk [vmem:[#allocation2 + $0x68] sm:$0xff] %vm249_vm2, %v246_v56  ;;  %262 = vst.msk [vmem:[#allocation2 + $0x60] sm:$0xff] %vm249_vm2, %v245_v57 }
  0xbd   :  { %v216_v59 = vpop.permute.xlu1 %215  ;;  %v214_v61 = vpop.permute.xlu0 %213 }
  0xbe   :  { %v248_v62 = vadd.f32 %v216_v59, %v184_v58  ;;  %v247_v63 = vadd.f32 %v214_v61, %v183_v60 }
  0xbf   :  { %v277_v46 = vld [vmem:[#allocation2 + $0x58] sm:$0xff]  ;;  %v276_v48 = vld [vmem:[#allocation2 + $0x50] sm:$0xff] }
  0xc0   :  { %265 = vst.msk [vmem:[#allocation2 + $0x78] sm:$0xff] %vm249_vm2, %v248_v62  ;;  %264 = vst.msk [vmem:[#allocation2 + $0x70] sm:$0xff] %vm249_vm2, %v247_v63 }
  0xc1   :  { %v285_v16 = vpop.permute.xlu1 %284  ;;  %v283_v18 = vpop.permute.xlu0 %282 }
  0xc2   :  { %v331_v20 = vadd.f32 %v285_v16, %v267_v17  ;;  %v330_v21 = vadd.f32 %v283_v18, %v266_v19 }
  0xc3   :  { %v279_v52 = vld [vmem:[#allocation2 + $0x68] sm:$0xff]  ;;  %v278_v54 = vld [vmem:[#allocation2 + $0x60] sm:$0xff] }
  0xc4   :  { %348 = vst.msk [vmem:[#allocation2 + $0x8] sm:$0xff] %vm346_vm3, %v331_v20  ;;  %347 = vst.msk [vmem:[#allocation2] sm:$0xff] %vm346_vm3, %v330_v21 }
  0xc5   :  { %v289_v23 = vpop.permute.xlu1 %288  ;;  %v287_v25 = vpop.permute.xlu0 %286 }
  0xc6   :  { %v333_v26 = vadd.f32 %v289_v23, %v269_v22  ;;  %v332_v27 = vadd.f32 %v287_v25, %v268_v24 }
  0xc7   :  { %v281_v58 = vld [vmem:[#allocation2 + $0x78] sm:$0xff]  ;;  %v280_v60 = vld [vmem:[#allocation2 + $0x70] sm:$0xff] }
  0xc8   :  { %350 = vst.msk [vmem:[#allocation2 + $0x18] sm:$0xff] %vm346_vm3, %v333_v26  ;;  %349 = vst.msk [vmem:[#allocation2 + $0x10] sm:$0xff] %vm346_vm3, %v332_v27 }
  0xc9   :  { %v293_v29 = vpop.permute.xlu1 %292  ;;  %v291_v31 = vpop.permute.xlu0 %290 }
  0xca   :  { %v335_v32 = vadd.f32 %v293_v29, %v271_v28  ;;  %v334_v33 = vadd.f32 %v291_v31, %v270_v30 }
  0xcb   :  { %v364_v17 = vld [vmem:[#allocation2 + $0x8] sm:$0xff]  ;;  %v363_v19 = vld [vmem:[#allocation2] sm:$0xff] }
  0xcc   :  { %352 = vst.msk [vmem:[#allocation2 + $0x28] sm:$0xff] %vm346_vm3, %v335_v32  ;;  %351 = vst.msk [vmem:[#allocation2 + $0x20] sm:$0xff] %vm346_vm3, %v334_v33 }
  0xcd   :  { %v297_v35 = vpop.permute.xlu1 %296  ;;  %v295_v37 = vpop.permute.xlu0 %294 }
  0xce   :  { %v337_v38 = vadd.f32 %v297_v35, %v273_v34  ;;  %v336_v39 = vadd.f32 %v295_v37, %v272_v36 }
  0xcf   :  { %v366_v22 = vld [vmem:[#allocation2 + $0x18] sm:$0xff]  ;;  %v365_v24 = vld [vmem:[#allocation2 + $0x10] sm:$0xff] }
  0xd0   :  { %354 = vst.msk [vmem:[#allocation2 + $0x38] sm:$0xff] %vm346_vm3, %v337_v38  ;;  %353 = vst.msk [vmem:[#allocation2 + $0x30] sm:$0xff] %vm346_vm3, %v336_v39 }
  0xd1   :  { %v301_v41 = vpop.permute.xlu1 %300  ;;  %v299_v43 = vpop.permute.xlu0 %298 }
  0xd2   :  { %v339_v44 = vadd.f32 %v301_v41, %v275_v40  ;;  %v338_v45 = vadd.f32 %v299_v43, %v274_v42 }
  0xd3   :  { %v368_v28 = vld [vmem:[#allocation2 + $0x28] sm:$0xff]  ;;  %v367_v30 = vld [vmem:[#allocation2 + $0x20] sm:$0xff] }
  0xd4   :  { %356 = vst.msk [vmem:[#allocation2 + $0x48] sm:$0xff] %vm346_vm3, %v339_v44  ;;  %355 = vst.msk [vmem:[#allocation2 + $0x40] sm:$0xff] %vm346_vm3, %v338_v45 }
  0xd5   :  { %v305_v47 = vpop.permute.xlu1 %304  ;;  %v303_v49 = vpop.permute.xlu0 %302 }
  0xd6   :  { %v341_v50 = vadd.f32 %v305_v47, %v277_v46  ;;  %v340_v51 = vadd.f32 %v303_v49, %v276_v48 }
  0xd7   :  { %v370_v36 = vld [vmem:[#allocation2 + $0x38] sm:$0xff]  ;;  %v369_v38 = vld [vmem:[#allocation2 + $0x30] sm:$0xff] }
  0xd8   :  { %358 = vst.msk [vmem:[#allocation2 + $0x58] sm:$0xff] %vm346_vm3, %v341_v50  ;;  %357 = vst.msk [vmem:[#allocation2 + $0x50] sm:$0xff] %vm346_vm3, %v340_v51 }
  0xd9   :  { %v309_v53 = vpop.permute.xlu1 %308  ;;  %v307_v55 = vpop.permute.xlu0 %306 }
  0xda   :  { %v343_v56 = vadd.f32 %v309_v53, %v279_v52  ;;  %v342_v57 = vadd.f32 %v307_v55, %v278_v54 }
  0xdb   :  { %v372_v44 = vld [vmem:[#allocation2 + $0x48] sm:$0xff]  ;;  %v371_v46 = vld [vmem:[#allocation2 + $0x40] sm:$0xff] }
  0xdc   :  { %360 = vst.msk [vmem:[#allocation2 + $0x68] sm:$0xff] %vm346_vm3, %v343_v56  ;;  %359 = vst.msk [vmem:[#allocation2 + $0x60] sm:$0xff] %vm346_vm3, %v342_v57 }
  0xdd   :  { %v313_v59 = vpop.permute.xlu1 %312  ;;  %v311_v61 = vpop.permute.xlu0 %310 }
  0xde   :  { %v345_v62 = vadd.f32 %v313_v59, %v281_v58  ;;  %v344_v63 = vadd.f32 %v311_v61, %v280_v60 }
  0xdf   :  { %v374_v56 = vld [vmem:[#allocation2 + $0x58] sm:$0xff]  ;;  %v373_v58 = vld [vmem:[#allocation2 + $0x50] sm:$0xff] }
  0xe0   :  { %362 = vst.msk [vmem:[#allocation2 + $0x78] sm:$0xff] %vm346_vm3, %v345_v62  ;;  %361 = vst.msk [vmem:[#allocation2 + $0x70] sm:$0xff] %vm346_vm3, %v344_v63 }
  0xe1   :  { %v382_v16 = vpop.permute.xlu1 %381  ;;  %v380_v18 = vpop.permute.xlu0 %379 }
  0xe2   :  { %v428_v20 = vadd.f32 %v382_v16, %v364_v17  ;;  %v427_v21 = vadd.f32 %v380_v18, %v363_v19 }
  0xe4   :  { %445 = vst.msk [vmem:[#allocation2 + $0x8] sm:$0xff] %vm443_vm4, %v428_v20  ;;  %444 = vst.msk [vmem:[#allocation2] sm:$0xff] %vm443_vm4, %v427_v21 }
  0xe5   :  { %v386_v23 = vpop.permute.xlu1 %385  ;;  %v384_v25 = vpop.permute.xlu0 %383 }
  0xe6   :  { %v430_v26 = vadd.f32 %v386_v23, %v366_v22  ;;  %v429_v27 = vadd.f32 %v384_v25, %v365_v24  ;;  %v376_v22 = vld [vmem:[#allocation2 + $0x68] sm:$0xff]  ;;  %v375_v24 = vld [vmem:[#allocation2 + $0x60] sm:$0xff] }
  0xe8   :  { %447 = vst.msk [vmem:[#allocation2 + $0x18] sm:$0xff] %vm443_vm4, %v430_v26  ;;  %446 = vst.msk [vmem:[#allocation2 + $0x10] sm:$0xff] %vm443_vm4, %v429_v27 }
  0xe9   :  { %v390_v29 = vpop.permute.xlu1 %389  ;;  %v388_v31 = vpop.permute.xlu0 %387 }
  0xea   :  { %v432_v32 = vadd.f32 %v390_v29, %v368_v28  ;;  %v431_v33 = vadd.f32 %v388_v31, %v367_v30 }
  0xeb   :  { %v1185_v34 = vld [vmem:[#allocation2 + $0x8] sm:$0xff]  ;;  %v1187_v35 = vld [vmem:[#allocation2] sm:$0xff] }
  0xec   :  { %477 = vst.msk [vmem:[#allocation3 + $0x8] sm:$0xff] %vm39_vm0, %v1185_v34  ;;  %476 = vst.msk [vmem:[#allocation3] sm:$0xff] %vm39_vm0, %v1187_v35  ;;  %v575_v20 = vrot.slane %v1185_v34, 1  ;;  %v574_v21 = vrot.slane %v1187_v35, 1 }
  0xed   :  { %449 = vst.msk [vmem:[#allocation2 + $0x28] sm:$0xff] %vm443_vm4, %v432_v32  ;;  %448 = vst.msk [vmem:[#allocation2 + $0x20] sm:$0xff] %vm443_vm4, %v431_v33  ;;  %v394_v37 = vpop.permute.xlu1 %393  ;;  %v392_v39 = vpop.permute.xlu0 %391 }
  0xee   :  { %v434_v40 = vadd.f32 %v394_v37, %v370_v36  ;;  %v433_v41 = vadd.f32 %v392_v39, %v369_v38  ;;  %v576_v37 = vsel %vm573_vm6, %v574_v21, %v575_v20 }
  0xef   :  { %v1195_v42 = vld [vmem:[#allocation2 + $0x18] sm:$0xff]  ;;  %v1197_v43 = vld [vmem:[#allocation2 + $0x10] sm:$0xff] }
  0xf0   :  { %479 = vst.msk [vmem:[#allocation3 + $0x18] sm:$0xff] %vm39_vm0, %v1195_v42  ;;  %478 = vst.msk [vmem:[#allocation3 + $0x10] sm:$0xff] %vm39_vm0, %v1197_v43  ;;  %v578_v38 = vrot.slane %v1195_v42, 1  ;;  %v577_v39 = vrot.slane %v1197_v43, 1 }
  0xf1   :  { %451 = vst.msk [vmem:[#allocation2 + $0x38] sm:$0xff] %vm443_vm4, %v434_v40  ;;  %450 = vst.msk [vmem:[#allocation2 + $0x30] sm:$0xff] %vm443_vm4, %v433_v41  ;;  %v398_v45 = vpop.permute.xlu1 %397  ;;  %v396_v47 = vpop.permute.xlu0 %395  ;;  %v378_v41 = vld [vmem:[#allocation2 + $0x78] sm:$0xff] }
  0xf2   :  { %v436_v48 = vadd.f32 %v398_v45, %v372_v44  ;;  %v435_v49 = vadd.f32 %v396_v47, %v371_v46 }
  0xf3   :  { %v493_v50 = vld [vmem:[#allocation3 + $0x9] sm:$0x7f]  ;;  %v492_v51 = vld [vmem:[#allocation3 + $0x1] sm:$0xff] }
  0xf4   :  { %v1205_v52 = vld [vmem:[#allocation2 + $0x28] sm:$0xff]  ;;  %v509_v53 = vadd.f32 %v493_v50, %v1185_v34  ;;  %v508_v54 = vadd.f32 %v492_v51, %v1187_v35  ;;  %v1211_v55 = vld [vmem:[#allocation2 + $0x20] sm:$0xff]  ;;  %453 = vst.msk [vmem:[#allocation2 + $0x48] sm:$0xff] %vm443_vm4, %v436_v48  ;;  %452 = vst.msk [vmem:[#allocation2 + $0x40] sm:$0xff] %vm443_vm4, %v435_v49 }
  0xf5   :  { %481 = vst.msk [vmem:[#allocation3 + $0x28] sm:$0xff] %vm39_vm0, %v1205_v52  ;;  %480 = vst.msk [vmem:[#allocation3 + $0x20] sm:$0xff] %vm39_vm0, %v1211_v55  ;;  %v402_v57 = vpop.permute.xlu1 %401  ;;  %v400_v59 = vpop.permute.xlu0 %399  ;;  %v377_v49 = vld [vmem:[#allocation2 + $0x70] sm:$0xff] }
  0xf6   :  { %526 = vst.msk [vmem:[#allocation3 + $0x9] sm:$0x7f] %vm525_vm5, %v509_v53  ;;  %v438_v60 = vadd.f32 %v402_v57, %v374_v56  ;;  %v437_v61 = vadd.f32 %v400_v59, %v373_v58 }
  0xf7   :  { %524 = vst.msk [vmem:[#allocation3 + $0x1] sm:$0xff] %vm39_vm0, %v508_v54  ;;  %v495_v62 = vld [vmem:[#allocation3 + $0x19] sm:$0x7f]  ;;  %v494_v63 = vld [vmem:[#allocation3 + $0x11] sm:$0xff] }
  0xf8   :  { %v1219_v16 = vld [vmem:[#allocation2 + $0x38] sm:$0xff]  ;;  %v511_v17 = vadd.f32 %v495_v62, %v1195_v42  ;;  %v510_v18 = vadd.f32 %v494_v63, %v1197_v43  ;;  %v1225_v19 = vld [vmem:[#allocation2 + $0x30] sm:$0xff]  ;;  %455 = vst.msk [vmem:[#allocation2 + $0x58] sm:$0xff] %vm443_vm4, %v438_v60  ;;  %454 = vst.msk [vmem:[#allocation2 + $0x50] sm:$0xff] %vm443_vm4, %v437_v61  ;;  %v579_v60 = vsel %vm573_vm6, %v577_v39, %v578_v38 }
  0xf9   :  { %483 = vst.msk [vmem:[#allocation3 + $0x38] sm:$0xff] %vm39_vm0, %v1219_v16  ;;  %482 = vst.msk [vmem:[#allocation3 + $0x30] sm:$0xff] %vm39_vm0, %v1225_v19  ;;  %v406_v23 = vpop.permute.xlu1 %405  ;;  %v404_v25 = vpop.permute.xlu0 %403 }
  0xfa   :  { %528 = vst.msk [vmem:[#allocation3 + $0x19] sm:$0x7f] %vm525_vm5, %v511_v17  ;;  %v440_v26 = vadd.f32 %v406_v23, %v376_v22  ;;  %v439_v27 = vadd.f32 %v404_v25, %v375_v24  ;;  %v581_v17 = vrot.slane %v1205_v52, 1 }
  0xfb   :  { %527 = vst.msk [vmem:[#allocation3 + $0x11] sm:$0xff] %vm39_vm0, %v510_v18  ;;  %v1235_v29 = vld [vmem:[#allocation2 + $0x48] sm:$0xff]  ;;  %v1237_v30 = vld [vmem:[#allocation2 + $0x40] sm:$0xff]  ;;  %v580_v18 = vrot.slane %v1211_v55, 1 }
  0xfc   :  { %v497_v28 = vld [vmem:[#allocation3 + $0x29] sm:$0x7f]  ;;  %v496_v32 = vld [vmem:[#allocation3 + $0x21] sm:$0xff]  ;;  %485 = vst.msk [vmem:[#allocation3 + $0x48] sm:$0xff] %vm39_vm0, %v1235_v29  ;;  %484 = vst.msk [vmem:[#allocation3 + $0x40] sm:$0xff] %vm39_vm0, %v1237_v30 }
  0xfd   :  { %v513_v31 = vadd.f32 %v497_v28, %v1205_v52  ;;  %457 = vst.msk [vmem:[#allocation2 + $0x68] sm:$0xff] %vm443_vm4, %v440_v26  ;;  %456 = vst.msk [vmem:[#allocation2 + $0x60] sm:$0xff] %vm443_vm4, %v439_v27  ;;  %v512_v40 = vadd.f32 %v496_v32, %v1211_v55  ;;  %v410_v44 = vpop.permute.xlu1 %409  ;;  %v408_v45 = vpop.permute.xlu0 %407  ;;  %v582_v28 = vsel %vm573_vm6, %v580_v18, %v581_v17  ;;  %v583_v32 = vrot.slane %v1225_v19, 1 }
  0xfe   :  { %v541_v33 = vld [vmem:[#allocation3] sm:$0xff]  ;;  %v542_v36 = vld [vmem:[#allocation3 + $0x8] sm:$0x7f]  ;;  %v442_v48 = vadd.f32 %v410_v44, %v378_v41  ;;  %v441_v54 = vadd.f32 %v408_v45, %v377_v49  ;;  %v586_v49 = vrot.slane %v1237_v30, 1 }
  0xff   :  { %v614_v46 = vadd.f32 %v576_v37, %v541_v33  ;;  %v615_v47 = vadd.f32 %v575_v20, %v542_v36  ;;  %530 = vst.msk [vmem:[#allocation3 + $0x29] sm:$0x7f] %vm525_vm5, %v513_v31  ;;  %v1252_v51 = vld [vmem:[#allocation2 + $0x58] sm:$0xff]  ;;  %v1254_v53 = vld [vmem:[#allocation2 + $0x50] sm:$0xff]  ;;  %v584_v31 = vrot.slane %v1219_v16, 1 }
 0x100   :  { %529 = vst.msk [vmem:[#allocation3 + $0x21] sm:$0xff] %vm39_vm0, %v512_v40  ;;  %v499_v50 = vld [vmem:[#allocation3 + $0x39] sm:$0x7f]  ;;  %v498_v57 = vld [vmem:[#allocation3 + $0x31] sm:$0xff]  ;;  %487 = vst.msk [vmem:[#allocation3 + $0x58] sm:$0xff] %vm39_vm0, %v1252_v51 }
 0x101   :  { %630 = vst.msk [vmem:[#allocation3] sm:$0xff] %vm39_vm0, %v614_v46  ;;  %v515_v56 = vadd.f32 %v499_v50, %v1219_v16  ;;  %486 = vst.msk [vmem:[#allocation3 + $0x50] sm:$0xff] %vm39_vm0, %v1254_v53  ;;  %v514_v61 = vadd.f32 %v498_v57, %v1225_v19 }
 0x102   :  { %631 = vst.msk [vmem:[#allocation3 + $0x8] sm:$0x7f] %vm525_vm5, %v615_v47  ;;  %v543_v58 = vld [vmem:[#allocation3 + $0x10] sm:$0xff]  ;;  %v544_v59 = vld [vmem:[#allocation3 + $0x18] sm:$0x7f] }
 0x103   :  { %459 = vst.msk [vmem:[#allocation2 + $0x78] sm:$0xff] %vm443_vm4, %v442_v48  ;;  %458 = vst.msk [vmem:[#allocation2 + $0x70] sm:$0xff] %vm443_vm4, %v441_v54  ;;  %v616_v62 = vadd.f32 %v579_v60, %v543_v58  ;;  %v617_v63 = vadd.f32 %v578_v38, %v544_v59  ;;  %v501_v20 = vld [vmem:[#allocation3 + $0x49] sm:$0x7f]  ;;  %v500_v21 = vld [vmem:[#allocation3 + $0x41] sm:$0xff]  ;;  %v587_v48 = vrot.slane %v1235_v29, 1  ;;  %v585_v59 = vsel %vm573_vm6, %v583_v32, %v584_v31 }
 0x104   :  { %532 = vst.msk [vmem:[#allocation3 + $0x39] sm:$0x7f] %vm525_vm5, %v515_v56  ;;  %v1271_v22 = vld [vmem:[#allocation2 + $0x68] sm:$0xff]  ;;  %v517_v23 = vadd.f32 %v501_v20, %v1235_v29  ;;  %v516_v24 = vadd.f32 %v500_v21, %v1237_v30  ;;  %v1279_v25 = vld [vmem:[#allocation2 + $0x60] sm:$0xff]  ;;  %v713_v54 = vrot.slane %v1185_v34, 2  ;;  %v712_v56 = vrot.slane %v1187_v35, 2 }
 0x105   :  { %531 = vst.msk [vmem:[#allocation3 + $0x31] sm:$0xff] %vm39_vm0, %v514_v61  ;;  %632 = vst.msk [vmem:[#allocation3 + $0x10] sm:$0xff] %vm39_vm0, %v616_v62 }
 0x106   :  { %633 = vst.msk [vmem:[#allocation3 + $0x18] sm:$0x7f] %vm525_vm5, %v617_v63  ;;  %534 = vst.msk [vmem:[#allocation3 + $0x49] sm:$0x7f] %vm525_vm5, %v517_v23 }
 0x107   :  { %489 = vst.msk [vmem:[#allocation3 + $0x68] sm:$0xff] %vm39_vm0, %v1271_v22  ;;  %488 = vst.msk [vmem:[#allocation3 + $0x60] sm:$0xff] %vm39_vm0, %v1279_v25  ;;  %v545_v26 = vld [vmem:[#allocation3 + $0x20] sm:$0xff]  ;;  %v546_v27 = vld [vmem:[#allocation3 + $0x28] sm:$0x7f] }
 0x108   :  { %533 = vst.msk [vmem:[#allocation3 + $0x41] sm:$0xff] %vm39_vm0, %v516_v24  ;;  %v618_v37 = vadd.f32 %v582_v28, %v545_v26  ;;  %v619_v38 = vadd.f32 %v581_v17, %v546_v27  ;;  %v503_v39 = vld [vmem:[#allocation3 + $0x59] sm:$0x7f]  ;;  %v502_v45 = vld [vmem:[#allocation3 + $0x51] sm:$0xff]  ;;  %v590_v17 = vrot.slane %v1252_v51, 1  ;;  %v588_v27 = vsel %vm573_vm6, %v586_v49, %v587_v48 }
 0x109   :  { %v646_v33 = vld [vmem:[#allocation3 + $0x2] sm:$0xff]  ;;  %v647_v36 = vld [vmem:[#allocation3 + $0xa] sm:$0x3f]  ;;  %v519_v44 = vadd.f32 %v503_v39, %v1252_v51  ;;  %v518_v50 = vadd.f32 %v502_v45, %v1254_v53  ;;  %v593_v49 = vrot.slane %v1271_v22, 1 }
 0x10a   :  { %v662_v40 = vadd.f32 %v646_v33, %v1187_v35  ;;  %v663_v41 = vadd.f32 %v647_v36, %v1185_v34  ;;  %v1291_v46 = vld [vmem:[#allocation2 + $0x78] sm:$0xff]  ;;  %v1293_v47 = vld [vmem:[#allocation2 + $0x70] sm:$0xff]  ;;  %634 = vst.msk [vmem:[#allocation3 + $0x20] sm:$0xff] %vm39_vm0, %v618_v37  ;;  %v589_v35 = vrot.slane %v1254_v53, 1  ;;  %v716_v33 = vrot.slane %v1195_v42, 2 }
 0x10b   :  { %635 = vst.msk [vmem:[#allocation3 + $0x28] sm:$0x7f] %vm525_vm5, %v619_v38  ;;  %536 = vst.msk [vmem:[#allocation3 + $0x59] sm:$0x7f] %vm525_vm5, %v519_v44  ;;  %v714_v36 = vsel %vm711_vm8, %v712_v56, %v713_v54  ;;  %v715_v37 = vrot.slane %v1197_v43, 2 }
 0x10c   :  { %491 = vst.msk [vmem:[#allocation3 + $0x78] sm:$0xff] %vm39_vm0, %v1291_v46  ;;  %490 = vst.msk [vmem:[#allocation3 + $0x70] sm:$0xff] %vm39_vm0, %v1293_v47  ;;  %v547_v57 = vld [vmem:[#allocation3 + $0x30] sm:$0xff]  ;;  %v548_v58 = vld [vmem:[#allocation3 + $0x38] sm:$0x7f] }
 0x10d   :  { %678 = vst.msk [vmem:[#allocation3 + $0x2] sm:$0xff] %vm39_vm0, %v662_v40  ;;  %v648_v60 = vld [vmem:[#allocation3 + $0x12] sm:$0xff]  ;;  %v649_v61 = vld [vmem:[#allocation3 + $0x1a] sm:$0x3f]  ;;  %v620_v62 = vadd.f32 %v585_v59, %v547_v57  ;;  %v621_v63 = vadd.f32 %v584_v31, %v548_v58  ;;  %535 = vst.msk [vmem:[#allocation3 + $0x51] sm:$0xff] %vm39_vm0, %v518_v50  ;;  %v591_v40 = vsel %vm573_vm6, %v589_v35, %v590_v17 }
 0x10e   :  { %680 = vst.msk [vmem:[#allocation3 + $0xa] sm:$0x3f] %vm679_vm7, %v663_v41  ;;  %v505_v34 = vld [vmem:[#allocation3 + $0x69] sm:$0x7f]  ;;  %v664_v18 = vadd.f32 %v648_v60, %v1197_v43  ;;  %v665_v20 = vadd.f32 %v649_v61, %v1195_v42  ;;  %v504_v23 = vld [vmem:[#allocation3 + $0x61] sm:$0xff]  ;;  %v592_v60 = vrot.slane %v1279_v25, 1 }
 0x10f   :  { %v521_v21 = vadd.f32 %v505_v34, %v1271_v22  ;;  %636 = vst.msk [vmem:[#allocation3 + $0x30] sm:$0xff] %vm39_vm0, %v620_v62  ;;  %v549_v24 = vld [vmem:[#allocation3 + $0x40] sm:$0xff]  ;;  %v550_v26 = vld [vmem:[#allocation3 + $0x48] sm:$0x7f]  ;;  %v520_v28 = vadd.f32 %v504_v23, %v1279_v25  ;;  %v784_v34 = vmul.f32 0.5, %v975_v1  ;;  %v717_v23 = vsel %vm711_vm8, %v715_v37, %v716_v33 }
 0x110   :  { %637 = vst.msk [vmem:[#allocation3 + $0x38] sm:$0x7f] %vm525_vm5, %v621_v63  ;;  %v622_v31 = vadd.f32 %v588_v27, %v549_v24  ;;  %v623_v32 = vadd.f32 %v587_v48, %v550_v26  ;;  %v718_v27 = vrot.slane %v1211_v55, 2 }
 0x111   :  { %681 = vst.msk [vmem:[#allocation3 + $0x12] sm:$0xff] %vm39_vm0, %v664_v18  ;;  %537 = vst.msk [vmem:[#allocation3 + $0x61] sm:$0xff] %vm39_vm0, %v520_v28  ;;  %v785_v18 = vmul.f32 0.5, %v983_v3 }
 0x112   :  { %682 = vst.msk [vmem:[#allocation3 + $0x1a] sm:$0x3f] %vm679_vm7, %v665_v20  ;;  %v650_v38 = vld [vmem:[#allocation3 + $0x22] sm:$0xff]  ;;  %v651_v39 = vld [vmem:[#allocation3 + $0x2a] sm:$0x3f] }
 0x113   :  { %538 = vst.msk [vmem:[#allocation3 + $0x69] sm:$0x7f] %vm525_vm5, %v521_v21  ;;  %639 = vst.msk [vmem:[#allocation3 + $0x48] sm:$0x7f] %vm525_vm5, %v623_v32  ;;  %v507_v41 = vld [vmem:[#allocation3 + $0x79] sm:$0x7f]  ;;  %v666_v48 = vadd.f32 %v650_v38, %v1211_v55  ;;  %v667_v42 = vadd.f32 %v651_v39, %v1205_v52  ;;  %v594_v32 = vsel %vm573_vm6, %v592_v60, %v593_v49 }
 0x114   :  { %638 = vst.msk [vmem:[#allocation3 + $0x40] sm:$0xff] %vm39_vm0, %v622_v31  ;;  %v695_v44 = vld [vmem:[#allocation3] sm:$0xff]  ;;  %v523_v50 = vadd.f32 %v507_v41, %v1291_v46  ;;  %v506_v43 = vld [vmem:[#allocation3 + $0x71] sm:$0xff]  ;;  %v596_v39 = vrot.slane %v1291_v46, 1 }
 0x115   :  { %v696_v45 = vld [vmem:[#allocation3 + $0x8] sm:$0x3f]  ;;  %v752_v56 = vadd.f32 %v714_v36, %v695_v44  ;;  %v551_v58 = vld [vmem:[#allocation3 + $0x50] sm:$0xff]  ;;  %v552_v59 = vld [vmem:[#allocation3 + $0x58] sm:$0x7f]  ;;  %v522_v61 = vadd.f32 %v506_v43, %v1293_v47  ;;  %683 = vst.msk [vmem:[#allocation3 + $0x22] sm:$0xff] %vm39_vm0, %v666_v48 }
 0x116   :  { %v753_v57 = vadd.f32 %v713_v54, %v696_v45  ;;  %684 = vst.msk [vmem:[#allocation3 + $0x2a] sm:$0x3f] %vm679_vm7, %v667_v42  ;;  %v624_v62 = vadd.f32 %v591_v40, %v551_v58  ;;  %v625_v63 = vadd.f32 %v590_v17, %v552_v59  ;;  %v719_v17 = vrot.slane %v1205_v52, 2 }
 0x117   :  { %540 = vst.msk [vmem:[#allocation3 + $0x79] sm:$0x7f] %vm525_vm5, %v523_v50  ;;  %v652_v54 = vld [vmem:[#allocation3 + $0x32] sm:$0xff]  ;;  %v653_v20 = vld [vmem:[#allocation3 + $0x3a] sm:$0x3f]  ;;  %v595_v40 = vrot.slane %v1293_v47, 1 }
 0x118   :  { %768 = vst.msk [vmem:[#allocation3] sm:$0xff] %vm39_vm0, %v752_v56  ;;  %539 = vst.msk [vmem:[#allocation3 + $0x71] sm:$0xff] %vm39_vm0, %v522_v61  ;;  %v697_v35 = vld [vmem:[#allocation3 + $0x10] sm:$0xff]  ;;  %v668_v24 = vadd.f32 %v652_v54, %v1225_v19  ;;  %v669_v1 = vadd.f32 %v653_v20, %v1219_v16  ;;  %v553_v28 = vld [vmem:[#allocation3 + $0x60] sm:$0xff]  ;;  %v800_v44 = vadd.f32 0.5, %v784_v34  ;;  %v787_v45 = vmul.f32 0.5, %v977_v2 }
 0x119   :  { %769 = vst.msk [vmem:[#allocation3 + $0x8] sm:$0x3f] %vm679_vm7, %v753_v57  ;;  %v698_v21 = vld [vmem:[#allocation3 + $0x18] sm:$0x3f]  ;;  %v754_v3 = vadd.f32 %v717_v23, %v697_v35  ;;  %v626_v37 = vadd.f32 %v594_v32, %v553_v28  ;;  %v801_v48 = vadd.f32 0.5, %v785_v18  ;;  %v1363_v42 = vmul.f32 0.5, %v985_v4 }
 0x11a   :  { %640 = vst.msk [vmem:[#allocation3 + $0x50] sm:$0xff] %vm39_vm0, %v624_v62  ;;  %v755_v26 = vadd.f32 %v716_v33, %v698_v21  ;;  %v554_v31 = vld [vmem:[#allocation3 + $0x68] sm:$0x7f]  ;;  %685 = vst.msk [vmem:[#allocation3 + $0x32] sm:$0xff] %vm39_vm0, %v668_v24  ;;  %v786_v33 = vmul.f32 0.5, %v973_v0  ;;  %v720_v50 = vsel %vm711_vm8, %v718_v27, %v719_v17  ;;  %v722_v43 = vrot.slane %v1219_v16, 2 }
 0x11b   :  { %641 = vst.msk [vmem:[#allocation3 + $0x58] sm:$0x7f] %vm525_vm5, %v625_v63  ;;  %v654_v52 = vld [vmem:[#allocation3 + $0x42] sm:$0xff]  ;;  %v655_v36 = vld [vmem:[#allocation3 + $0x4a] sm:$0x3f]  ;;  %v627_v38 = vadd.f32 %v593_v49, %v554_v31  ;;  %v721_v56 = vrot.slane %v1225_v19, 2  ;;  %v597_v61 = vsel %vm573_vm6, %v595_v40, %v596_v39 }
 0x11c   :  { %686 = vst.msk [vmem:[#allocation3 + $0x3a] sm:$0x3f] %vm679_vm7, %v669_v1  ;;  %771 = vst.msk [vmem:[#allocation3 + $0x18] sm:$0x3f] %vm679_vm7, %v755_v26  ;;  %v670_v55 = vadd.f32 %v654_v52, %v1237_v30  ;;  %v671_v41 = vadd.f32 %v655_v36, %v1235_v29  ;;  %v699_v0 = vld [vmem:[#allocation3 + $0x20] sm:$0xff]  ;;  %v725_v57 = vrot.slane %v1235_v29, 2 }
 0x11d   :  { %770 = vst.msk [vmem:[#allocation3 + $0x10] sm:$0xff] %vm39_vm0, %v754_v3  ;;  %642 = vst.msk [vmem:[#allocation3 + $0x60] sm:$0xff] %vm39_vm0, %v626_v37  ;;  %v700_v49 = vld [vmem:[#allocation3 + $0x28] sm:$0x3f]  ;;  %v756_v2 = vadd.f32 %v720_v50, %v699_v0  ;;  %v724_v58 = vrot.slane %v1237_v30, 2  ;;  %v788_v29 = vmul.f32 0.5, %v987_v5  ;;  %v723_v1 = vsel %vm711_vm8, %v721_v56, %v722_v43 }
 0x11e   :  { %643 = vst.msk [vmem:[#allocation3 + $0x68] sm:$0x7f] %vm525_vm5, %v627_v38  ;;  %v757_v4 = vadd.f32 %v719_v17, %v700_v49  ;;  %v802_v21 = vadd.f32 0.5, %v786_v33  ;;  %v803_v23 = vadd.f32 0.5, %v787_v45  ;;  %v791_v3 = vmul.f32 0.5, %v995_v6 }
 0x11f   :  { %687 = vst.msk [vmem:[#allocation3 + $0x42] sm:$0xff] %vm39_vm0, %v670_v55  ;;  %v555_v59 = vld [vmem:[#allocation3 + $0x70] sm:$0xff]  ;;  %v556_v60 = vld [vmem:[#allocation3 + $0x78] sm:$0x7f]  ;;  %v816_v62 = vld [vmem:[#allocation3] sm:$0xff]  ;;  %v726_v52 = vsel %vm711_vm8, %v724_v58, %v725_v57  ;;  %v728_v36 = vrot.slane %v1252_v51, 2 }
 0x120   :  { %688 = vst.msk [vmem:[#allocation3 + $0x4a] sm:$0x3f] %vm679_vm7, %v671_v41  ;;  %v628_v16 = vadd.f32 %v597_v61, %v555_v59  ;;  %v629_v18 = vadd.f32 %v596_v39, %v556_v60  ;;  %v817_v19 = vld [vmem:[#allocation3 + $0x8] sm:$0xff]  ;;  %v832_v54 = vmul.f32 0.02, %v816_v62  ;;  %v727_v33 = vrot.slane %v1254_v53, 2 }
 0x121   :  { %772 = vst.msk [vmem:[#allocation3 + $0x20] sm:$0xff] %vm39_vm0, %v756_v2  ;;  %v833_v35 = vmul.f32 0.02, %v817_v19  ;;  %v701_v17 = vld [vmem:[#allocation3 + $0x30] sm:$0xff]  ;;  %v804_v0 = vadd.f32 0.5, %v788_v29  ;;  %v790_v49 = vmul.f32 0.5, %v997_v7 }
 0x122   :  { %v656_v63 = vld [vmem:[#allocation3 + $0x52] sm:$0xff]  ;;  %v657_v34 = vld [vmem:[#allocation3 + $0x5a] sm:$0x3f]  ;;  %773 = vst.msk [vmem:[#allocation3 + $0x28] sm:$0x3f] %vm679_vm7, %v757_v4  ;;  %v848_v5 = vsub.f32 %v800_v44, %v832_v54  ;;  %v758_v26 = vadd.f32 %v723_v1, %v701_v17  ;;  %v793_v56 = vmul.f32 0.5, %v999_v8  ;;  %v729_v7 = vsel %vm711_vm8, %v727_v33, %v728_v36 }
 0x123   :  { %v672_v20 = vadd.f32 %v656_v63, %v1254_v53  ;;  %v673_v30 = vadd.f32 %v657_v34, %v1252_v51  ;;  %v702_v24 = vld [vmem:[#allocation3 + $0x38] sm:$0x3f]  ;;  %644 = vst.msk [vmem:[#allocation3 + $0x70] sm:$0xff] %vm39_vm0, %v628_v16  ;;  %v849_v32 = vsub.f32 %v801_v48, %v833_v35  ;;  %v805_v53 = vadd.f32 0.5, %v1363_v42 }
 0x124   :  { %645 = vst.msk [vmem:[#allocation3 + $0x78] sm:$0x7f] %vm525_vm5, %v629_v18  ;;  %v759_v27 = vadd.f32 %v722_v43, %v702_v24  ;;  %v818_v28 = vld [vmem:[#allocation3 + $0x10] sm:$0xff]  ;;  %v819_v31 = vld [vmem:[#allocation3 + $0x18] sm:$0xff]  ;;  %v807_v43 = vadd.f32 0.5, %v791_v3  ;;  %v792_v2 = vmul.f32 0.5, %v1007_v9 }
 0x125   :  { %689 = vst.msk [vmem:[#allocation3 + $0x52] sm:$0xff] %vm39_vm0, %v672_v20  ;;  %v658_v37 = vld [vmem:[#allocation3 + $0x62] sm:$0xff]  ;;  %v659_v38 = vld [vmem:[#allocation3 + $0x6a] sm:$0x3f]  ;;  %v834_v39 = vmul.f32 0.02, %v818_v28 }
 0x126   :  { %690 = vst.msk [vmem:[#allocation3 + $0x5a] sm:$0x3f] %vm679_vm7, %v673_v30  ;;  %775 = vst.msk [vmem:[#allocation3 + $0x38] sm:$0x3f] %vm679_vm7, %v759_v27  ;;  %v703_v6 = vld [vmem:[#allocation3 + $0x40] sm:$0xff]  ;;  %v674_v55 = vadd.f32 %v658_v37, %v1279_v25  ;;  %v675_v41 = vadd.f32 %v659_v38, %v1271_v22  ;;  %v731_v58 = vrot.slane %v1271_v22, 2 }
 0x127   :  { %864 = vst.msk [vmem:[#allocation7] sm:$0xff] %vm39_vm0, %v848_v5  ;;  %774 = vst.msk [vmem:[#allocation3 + $0x30] sm:$0xff] %vm39_vm0, %v758_v26  ;;  %v704_v40 = vld [vmem:[#allocation3 + $0x48] sm:$0x3f]  ;;  %v835_v44 = vmul.f32 0.02, %v819_v31  ;;  %v760_v51 = vadd.f32 %v726_v52, %v703_v6  ;;  %v850_v48 = vsub.f32 %v802_v21, %v834_v39 }
 0x128   :  { %865 = vst.msk [vmem:[#allocation7 + $0x8] sm:$0xff] %vm39_vm0, %v849_v32  ;;  %v761_v45 = vadd.f32 %v725_v57, %v704_v40  ;;  %691 = vst.msk [vmem:[#allocation3 + $0x62] sm:$0xff] %vm39_vm0, %v674_v55  ;;  %v820_v57 = vld [vmem:[#allocation3 + $0x20] sm:$0xff]  ;;  %v730_v9 = vrot.slane %v1279_v25, 2  ;;  %v806_v16 = vadd.f32 0.5, %v790_v49  ;;  %v795_v22 = vmul.f32 0.5, %v1009_v10 }
 0x129   :  { %692 = vst.msk [vmem:[#allocation3 + $0x6a] sm:$0x3f] %vm679_vm7, %v675_v41  ;;  %v851_v50 = vsub.f32 %v803_v23, %v835_v44  ;;  %v821_v4 = vld [vmem:[#allocation3 + $0x28] sm:$0xff]  ;;  %v836_v42 = vmul.f32 0.02, %v820_v57  ;;  %v809_v35 = vadd.f32 0.5, %v793_v56 }
 0x12a   :  { %776 = vst.msk [vmem:[#allocation3 + $0x40] sm:$0xff] %vm39_vm0, %v760_v51  ;;  %866 = vst.msk [vmem:[#allocation7 + $0x10] sm:$0xff] %vm39_vm0, %v850_v48  ;;  %v837_v34 = vmul.f32 0.02, %v821_v4  ;;  %v794_v25 = vmul.f32 0.5, %v1017_v11  ;;  %v808_v17 = vadd.f32 0.5, %v792_v2  ;;  %v732_v1 = vsel %vm711_vm8, %v730_v9, %v731_v58 }
 0x12b   :  { %777 = vst.msk [vmem:[#allocation3 + $0x48] sm:$0x3f] %vm679_vm7, %v761_v45  ;;  %v660_v59 = vld [vmem:[#allocation3 + $0x72] sm:$0xff]  ;;  %v661_v60 = vld [vmem:[#allocation3 + $0x7a] sm:$0x3f]  ;;  %v852_v54 = vsub.f32 %v804_v0, %v836_v42  ;;  %v734_v5 = vrot.slane %v1291_v46, 2 }
 0x12c   :  { %867 = vst.msk [vmem:[#allocation7 + $0x18] sm:$0xff] %vm39_vm0, %v851_v50  ;;  %v705_v8 = vld [vmem:[#allocation3 + $0x50] sm:$0xff]  ;;  %v676_v62 = vadd.f32 %v660_v59, %v1293_v47  ;;  %v677_v63 = vadd.f32 %v661_v60, %v1291_v46  ;;  %v853_v30 = vsub.f32 %v805_v53, %v837_v34  ;;  %v733_v3 = vrot.slane %v1293_v47, 2 }
 0x12d   :  { %v706_v61 = vld [vmem:[#allocation3 + $0x58] sm:$0x3f]  ;;  %v762_v18 = vadd.f32 %v729_v7, %v705_v8  ;;  %868 = vst.msk [vmem:[#allocation7 + $0x20] sm:$0xff] %vm39_vm0, %v852_v54  ;;  %v797_v46 = vmul.f32 0.5, %v1019_v12  ;;  %v811_v38 = vadd.f32 0.5, %v795_v22  ;;  %v810_v39 = vadd.f32 0.5, %v794_v25 }
 0x12e   :  { %v763_v19 = vadd.f32 %v728_v36, %v706_v61  ;;  %693 = vst.msk [vmem:[#allocation3 + $0x72] sm:$0xff] %vm39_vm0, %v676_v62  ;;  %v822_v29 = vld [vmem:[#allocation3 + $0x30] sm:$0xff]  ;;  %v823_v20 = vld [vmem:[#allocation3 + $0x38] sm:$0xff]  ;;  %869 = vst.msk [vmem:[#allocation7 + $0x28] sm:$0xff] %vm39_vm0, %v853_v30  ;;  %v796_v6 = vmul.f32 0.5, %v1029_v13  ;;  %v735_v55 = vsel %vm711_vm8, %v733_v3, %v734_v5  ;;  %v799_v53 = vmul.f32 0.5, %v1031_v14 }
 0x12f   :  { %694 = vst.msk [vmem:[#allocation3 + $0x7a] sm:$0x3f] %vm679_vm7, %v677_v63  ;;  %v838_v21 = vmul.f32 0.02, %v822_v29  ;;  %v839_v23 = vmul.f32 0.02, %v823_v20 }
 0x130   :  { %778 = vst.msk [vmem:[#allocation3 + $0x50] sm:$0xff] %vm39_vm0, %v762_v18  ;;  %v707_v10 = vld [vmem:[#allocation3 + $0x60] sm:$0xff]  ;;  %v708_v24 = vld [vmem:[#allocation3 + $0x68] sm:$0x3f]  ;;  %v813_v0 = vadd.f32 0.5, %v797_v46  ;;  %v812_v13 = vadd.f32 0.5, %v796_v6 }
 0x131   :  { %779 = vst.msk [vmem:[#allocation3 + $0x58] sm:$0x3f] %vm679_vm7, %v763_v19  ;;  %v764_v11 = vadd.f32 %v732_v1, %v707_v10  ;;  %v765_v26 = vadd.f32 %v731_v58, %v708_v24  ;;  %v824_v27 = vld [vmem:[#allocation3 + $0x40] sm:$0xff]  ;;  %v854_v31 = vsub.f32 %v806_v16, %v838_v21  ;;  %v855_v32 = vsub.f32 %v807_v43, %v839_v23 }
 0x132   :  { %v825_v28 = vld [vmem:[#allocation3 + $0x48] sm:$0xff]  ;;  %v840_v52 = vmul.f32 0.02, %v824_v27  ;;  %v798_v43 = vmul.f32 0.5, %v1037_v15  ;;  %v815_v59 = vadd.f32 0.5, %v799_v53 }
 0x133   :  { %v841_v36 = vmul.f32 0.02, %v825_v28  ;;  %780 = vst.msk [vmem:[#allocation3 + $0x60] sm:$0xff] %vm39_vm0, %v764_v11  ;;  %870 = vst.msk [vmem:[#allocation7 + $0x30] sm:$0xff] %vm39_vm0, %v854_v31 }
 0x134   :  { %781 = vst.msk [vmem:[#allocation3 + $0x68] sm:$0x3f] %vm679_vm7, %v765_v26  ;;  %v856_v47 = vsub.f32 %v808_v17, %v840_v52  ;;  %v814_v60 = vadd.f32 0.5, %v798_v43 }
 0x135   :  { %871 = vst.msk [vmem:[#allocation7 + $0x38] sm:$0xff] %vm39_vm0, %v855_v32  ;;  %v857_v37 = vsub.f32 %v809_v35, %v841_v36  ;;  %v709_v40 = vld [vmem:[#allocation3 + $0x70] sm:$0xff] }
 0x136   :  { %v710_v33 = vld [vmem:[#allocation3 + $0x78] sm:$0x3f]  ;;  %v766_v41 = vadd.f32 %v735_v55, %v709_v40  ;;  %872 = vst.msk [vmem:[#allocation7 + $0x40] sm:$0xff] %vm39_vm0, %v856_v47 }
 0x137   :  { %v767_v44 = vadd.f32 %v734_v5, %v710_v33  ;;  %v826_v51 = vld [vmem:[#allocation3 + $0x50] sm:$0xff]  ;;  %873 = vst.msk [vmem:[#allocation7 + $0x48] sm:$0xff] %vm39_vm0, %v857_v37 }
 0x138   :  { %v827_v45 = vld [vmem:[#allocation3 + $0x58] sm:$0xff]  ;;  %v842_v48 = vmul.f32 0.02, %v826_v51  ;;  %782 = vst.msk [vmem:[#allocation3 + $0x70] sm:$0xff] %vm39_vm0, %v766_v41 }
 0x139   :  { %v843_v12 = vmul.f32 0.02, %v827_v45  ;;  %783 = vst.msk [vmem:[#allocation3 + $0x78] sm:$0x3f] %vm679_vm7, %v767_v44 }
 0x13a   :  { %v858_v49 = vsub.f32 %v810_v39, %v842_v48  ;;  %v828_v56 = vld [vmem:[#allocation3 + $0x60] sm:$0xff] }
 0x13b   :  { %v859_v50 = vsub.f32 %v811_v38, %v843_v12  ;;  %v829_v2 = vld [vmem:[#allocation3 + $0x68] sm:$0xff]  ;;  %v844_v57 = vmul.f32 0.02, %v828_v56 }
 0x13c   :  { %v845_v4 = vmul.f32 0.02, %v829_v2  ;;  %874 = vst.msk [vmem:[#allocation7 + $0x50] sm:$0xff] %vm39_vm0, %v858_v49 }
 0x13d   :  { %875 = vst.msk [vmem:[#allocation7 + $0x58] sm:$0xff] %vm39_vm0, %v859_v50  ;;  %v860_v7 = vsub.f32 %v812_v13, %v844_v57 }
 0x13e   :  { %v861_v58 = vsub.f32 %v813_v0, %v845_v4 }
 0x13f   :  { %v830_v42 = vld [vmem:[#allocation3 + $0x70] sm:$0xff]  ;;  %876 = vst.msk [vmem:[#allocation7 + $0x60] sm:$0xff] %vm39_vm0, %v860_v7 }
 0x140   :  { %v831_v8 = vld [vmem:[#allocation3 + $0x78] sm:$0xff]  ;;  %877 = vst.msk [vmem:[#allocation7 + $0x68] sm:$0xff] %vm39_vm0, %v861_v58  ;;  %v846_v14 = vmul.f32 0.02, %v830_v42 }
 0x141   :  { %v847_v15 = vmul.f32 0.02, %v831_v8 }
 0x142   :  { %v862_v61 = vsub.f32 %v814_v60, %v846_v14 }
 0x143   :  { %v863_v9 = vsub.f32 %v815_v59, %v847_v15 }
 0x144   :  { %878 = vst.msk [vmem:[#allocation7 + $0x70] sm:$0xff] %vm39_vm0, %v862_v61 }
 0x145   :  { %879 = vst.msk [vmem:[#allocation7 + $0x78] sm:$0xff] %vm39_vm0, %v863_v9 }
 0x146   :  { %936 = shalt.err (!%p933_p9)
}
 0x147   :  { %891 = dma.vmem_to_hbm [thread:$0]  %s886_s17, 2048, %s1447_s1, [#allocation6], %s950_s9, %s950_s9, %s951_s10  }
 0x148   :  { %947 = dma.done.wait [#allocation6], 2048  }
 0x149   :  { %948 = vsyncadd [#allocation6], 4294965248 }
 0x14a   :  { %895 = vsyncpa [#allocation5], 1 }
 0x14b   :  { %896 = vsyncpa [#allocation6], 1 }

</bundles_post_ra>
